<compile_context>
chip_gen: v7x
topology: tpu7x:2x2x1
jax: 0.10.0
libtpu: 0.0.40
codegen_flags: <defaults>
</compile_context>

<pallas_src>
import math

import jax
import jax.numpy as jnp
from jax.experimental import pallas as pl
from jax.experimental.pallas import tpu as pltpu


# --------------------------------------------------------------------------------------
# Kernel A: accumulate sum_text = a_dst @ text_h over edge tiles, then
#           t = (h * inv_deg * sum_text) @ W_inv + b_inv   (stored bf16 for Kernel B1)
# --------------------------------------------------------------------------------------
def _t_kernel(a_dst_ref, text_ref, hpre_ref, w_inv_ref, b_inv_ref, t_ref, acc_ref):
    k = pl.program_id(1)

    @pl.when(k == 0)
    def _():
        acc_ref[...] = jnp.zeros_like(acc_ref)

    acc_ref[...] += jnp.dot(a_dst_ref[...], text_ref[...],
                            preferred_element_type=jnp.float32)

    @pl.when(k == pl.num_programs(1) - 1)
    def _():
        h_o_r = (hpre_ref[...] * acc_ref[...]).astype(jnp.bfloat16)   # h * mean_text
        t = jnp.dot(h_o_r, w_inv_ref[...],
                    preferred_element_type=jnp.float32) + b_inv_ref[...]
        t_ref[...] = t.astype(t_ref.dtype)


# --------------------------------------------------------------------------------------
# Kernel B1: msg = a_srcT @ t accumulated over node-K tiles (bf16 output)
# --------------------------------------------------------------------------------------
def _msg_kernel(a_srcT_ref, t_ref, msg_ref, acc_ref):
    k = pl.program_id(1)

    @pl.when(k == 0)
    def _():
        acc_ref[...] = jnp.zeros_like(acc_ref)

    acc_ref[...] += jnp.dot(a_srcT_ref[...], t_ref[...],
                            preferred_element_type=jnp.float32)

    @pl.when(k == pl.num_programs(1) - 1)
    def _():
        msg_ref[...] = acc_ref[...].astype(msg_ref.dtype)


# --------------------------------------------------------------------------------------
# Kernel B2: agg = a_dst @ msg accumulated over edge tiles directly into the resident f32
#            output block, then h_out = agg * norm + bias_v
# --------------------------------------------------------------------------------------
def _agg_kernel(a_dst_ref, msg_ref, norm_ref, bias_ref, o_ref):
    k = pl.program_id(1)

    @pl.when(k == 0)
    def _():
        o_ref[...] = jnp.zeros_like(o_ref)

    o_ref[...] += jnp.dot(a_dst_ref[...], msg_ref[...],
                          preferred_element_type=jnp.float32)

    @pl.when(k == pl.num_programs(1) - 1)
    def _():
        o_ref[...] = o_ref[...] * norm_ref[...] + bias_ref[...]


# --------------------------------------------------------------------------------------
# Kernel C: relation linear on the ORIGINAL edge features: text_out = text_h @ W_rel + b_rel
# --------------------------------------------------------------------------------------
def _rel_kernel(text_ref, w_rel_ref, b_rel_ref, out_ref):
    out_ref[...] = (jnp.dot(text_ref[...], w_rel_ref[...],
                            preferred_element_type=jnp.float32) + b_rel_ref[...])


def _round_up(n, m):
    return ((n + m - 1) // m) * m


def _pad2(x, rows, cols):
    return jnp.pad(x, ((0, rows - x.shape[0]), (0, cols - x.shape[1])))


def compgcn_dg_pecf_forward(h, norm, text_h, a_dst, a_srcT,
                            w_inv, b_inv, w_rel, b_rel, bias_v,
                            *, tm=256, te=512):
    """Forward pass. Graph given densely: a_dst [N,E] (dst incidence), a_srcT [E,N] (src)."""
    N, d_in = h.shape
    E, r_in = text_h.shape
    d_out = w_inv.shape[1]
    r_out = w_rel.shape[1]
    assert d_in == r_in, "v_mul_e requires node_in_feat == rel_in_feat"
    assert tm % 128 == 0 and te % 128 == 0

    # ---- tile sizes (clamped for small inputs, multiples of 128) -----------------------
    tm_eff = min(tm, _round_up(N, 128))
    te_eff = min(te, _round_up(E, 128))

    # ---- padding to lane/sublane/tile multiples ----------------------------------------
    Np = _round_up(N, tm_eff)          # NOTE: on v7x prefer Np//tm >= 2 (even) so the
    Ep = _round_up(E, te_eff)          # "parallel" node/edge axes balance across both TCs.
    Dip = _round_up(d_in, 128)
    Dop = _round_up(d_out, 128)
    Rip = _round_up(r_in, 128)
    Rop = _round_up(r_out, 128)

    a_dst_f32 = _pad2(a_dst.astype(jnp.float32), Np, Ep)
    a_srcT_bf = _pad2(a_srcT, Ep, Np).astype(jnp.bfloat16)
    a_dst_bf = a_dst_f32.astype(jnp.bfloat16)

    # ---- wrapper-side precompute --------------------------------------------------------
    # inverse in-degree (exact, f32) folded into h: mean = inv_deg * sum.
    deg = jnp.sum(a_dst_f32, axis=-1, keepdims=True)
    inv_deg = 1.0 / jnp.maximum(deg, 1.0)
    h_pre = _pad2(h, Np, Dip) * inv_deg                                   # f32 [Np, Dip]
    text_bf = _pad2(text_h, Ep, Rip).astype(jnp.bfloat16)

    w_inv_bf = _pad2(w_inv, Dip, Dop).astype(jnp.bfloat16)
    b_inv_p = _pad2(b_inv.reshape(1, -1), 1, Dop)
    w_rel_bf = _pad2(w_rel, Rip, Rop).astype(jnp.bfloat16)
    b_rel_p = _pad2(b_rel.reshape(1, -1), 1, Rop)
    bias_v_p = _pad2(bias_v.reshape(1, -1), 1, Dop)
    norm_p = _pad2(norm, Np, 1)

    # ---- Call A: t = (h * inv_deg * (a_dst @ text)) @ W_inv + b_inv ---------------------
    t_bf = pl.pallas_call(
        _t_kernel,
        grid=(Np // tm_eff, Ep // te_eff),
        in_specs=[
            pl.BlockSpec((tm_eff, te_eff), lambda i, k: (i, k)),   # a_dst tile  (bf16)
            pl.BlockSpec((te_eff, Dip), lambda i, k: (k, 0)),      # text tile   (bf16)
            pl.BlockSpec((tm_eff, Dip), lambda i, k: (i, 0)),      # h*inv_deg   (f32)
            pl.BlockSpec((Dip, Dop), lambda i, k: (0, 0)),         # W_inv       (bf16)
            pl.BlockSpec((1, Dop), lambda i, k: (0, 0)),           # b_inv       (f32)
        ],
        out_specs=pl.BlockSpec((tm_eff, Dop), lambda i, k: (i, 0)),
        out_shape=jax.ShapeDtypeStruct((Np, Dop), jnp.bfloat16),
        scratch_shapes=[pltpu.VMEM((tm_eff, Dip), jnp.float32)],
        compiler_params=pltpu.CompilerParams(
            dimension_semantics=("parallel", "arbitrary")),
    )(a_dst_bf, text_bf, h_pre, w_inv_bf, b_inv_p)

    # ---- Call B1: msg = a_srcT @ t  (copy_u gather expressed as a matmul) ----------------
    msg_bf = pl.pallas_call(
        _msg_kernel,
        grid=(Ep // te_eff, Np // tm_eff),
        in_specs=[
            pl.BlockSpec((te_eff, tm_eff), lambda i, k: (i, k)),   # a_srcT tile (bf16)
            pl.BlockSpec((tm_eff, Dop), lambda i, k: (k, 0)),      # t tile      (bf16)
        ],
        out_specs=pl.BlockSpec((te_eff, Dop), lambda i, k: (i, 0)),
        out_shape=jax.ShapeDtypeStruct((Ep, Dop), jnp.bfloat16),
        scratch_shapes=[pltpu.VMEM((te_eff, Dop), jnp.float32)],
        compiler_params=pltpu.CompilerParams(
            dimension_semantics=("parallel", "arbitrary")),
    )(a_srcT_bf, t_bf)

    # ---- Call B2: h_out = (a_dst @ msg) * norm + bias_v ---------------------------------
    h_out_p = pl.pallas_call(
        _agg_kernel,
        grid=(Np // tm_eff, Ep // te_eff),
        in_specs=[
            pl.BlockSpec((tm_eff, te_eff), lambda i, k: (i, k)),   # a_dst tile  (bf16)
            pl.BlockSpec((te_eff, Dop), lambda i, k: (k, 0)),      # msg tile    (bf16)
            pl.BlockSpec((tm_eff, 1), lambda i, k: (i, 0)),        # norm        (f32)
            pl.BlockSpec((1, Dop), lambda i, k: (0, 0)),           # bias_v      (f32)
        ],
        out_specs=pl.BlockSpec((tm_eff, Dop), lambda i, k: (i, 0)),
        out_shape=jax.ShapeDtypeStruct((Np, Dop), jnp.float32),
        compiler_params=pltpu.CompilerParams(
            dimension_semantics=("parallel", "arbitrary")),
    )(a_dst_bf, msg_bf, norm_p, bias_v_p)

    # ---- Call C: text_out = text_h @ W_rel + b_rel (independent of the graph) -----------
    text_out_p = pl.pallas_call(
        _rel_kernel,
        grid=(Ep // te_eff,),
        in_specs=[
            pl.BlockSpec((te_eff, Rip), lambda i: (i, 0)),         # text tile   (bf16)
            pl.BlockSpec((Rip, Rop), lambda i: (0, 0)),            # W_rel       (bf16)
            pl.BlockSpec((1, Rop), lambda i: (0, 0)),              # b_rel       (f32)
        ],
        out_specs=pl.BlockSpec((te_eff, Rop), lambda i: (i, 0)),
        out_shape=jax.ShapeDtypeStruct((Ep, Rop), jnp.float32),
        compiler_params=pltpu.CompilerParams(dimension_semantics=("parallel",)),
    )(text_bf, w_rel_bf, b_rel_p)

    return h_out_p[:N, :d_out], text_out_p[:E, :r_out]


def _reference(h, norm, text_h, a_dst, a_srcT, w_inv, b_inv, w_rel, b_rel, bias_v):
    sum_text = a_dst @ text_h
    deg = a_dst.sum(-1, keepdims=True)
    h_o_r = h * (sum_text / jnp.maximum(deg, 1.0))
    t = h_o_r @ w_inv + b_inv
    agg = a_dst @ (a_srcT @ t)
    h_new = agg * norm + bias_v
    text_new = text_h @ w_rel + b_rel
    return h_new, text_new


if __name__ == "__main__":
    # Small synthetic graph with lane-dense (128) feature dims.
    # node_in_feat == rel_in_feat is required by the v_mul_e elementwise multiply.
    N, E = 200, 300
    node_in_feat = rel_in_feat = 128
    node_out_feat = 128
    rel_out_feat = 128

    key = jax.random.PRNGKey(0)
    k = jax.random.split(key, 8)

    h = jax.random.normal(k[0], (N, node_in_feat), jnp.float32)
    norm = jax.random.uniform(k[1], (N, 1), jnp.float32, minval=0.1, maxval=1.0)
    text_h = jax.random.normal(k[2], (E, rel_in_feat), jnp.float32)

    # Random graph: each edge gets a src and dst node; build dense incidence matrices.
    src = jax.random.randint(k[3], (E,), 0, N)
    dst = jax.random.randint(k[4], (E,), 0, N)
    a_dst = (jnp.arange(N)[:, None] == dst[None, :]).astype(jnp.float32)    # [N, E]
    a_srcT = (jnp.arange(N)[None, :] == src[:, None]).astype(jnp.float32)   # [E, N]

    # nn.Linear-style parameters (weights stored transposed [in, out]).
    w_inv = jax.random.normal(k[5], (node_in_feat, node_out_feat), jnp.float32) * 0.1
    b_inv = jax.random.normal(k[6], (1, node_out_feat), jnp.float32) * 0.1
    w_rel = jax.random.normal(k[7], (rel_in_feat, rel_out_feat), jnp.float32) * 0.1
    b_rel = jnp.full((1, rel_out_feat), 0.01, jnp.float32)
    bias_v = jnp.zeros((1, node_out_feat), jnp.float32)   # torch.nn.init.zeros_

    h_new, text_new = compgcn_dg_pecf_forward(
        h, norm, text_h, a_dst, a_srcT, w_inv, b_inv, w_rel, b_rel, bias_v)
    jax.block_until_ready((h_new, text_new))

    h_ref, text_ref = _reference(h, norm, text_h, a_dst, a_srcT,
                                 w_inv, b_inv, w_rel, b_rel, bias_v)

    assert h_new.shape == (N, node_out_feat)
    assert text_new.shape == (E, rel_out_feat)
    # bf16 operands on the MXU dots (f32 accumulation) => relaxed tolerance vs f32 ref.
    assert jnp.allclose(h_new, h_ref, atol=3e-2, rtol=3e-2)
    assert jnp.allclose(text_new, text_ref, atol=3e-2, rtol=3e-2)

    print("KERNEL_OK")
</pallas_src>

<mosaic_0001>
module attributes {stable_mosaic.version = 11 : i64} {
  func.func @_t_kernel(%arg0: i32, %arg1: i32, %arg2: memref<256x384xbf16, #tpu.memory_space<vmem>>, %arg3: memref<384x128xbf16, #tpu.memory_space<vmem>>, %arg4: memref<256x128xf32, #tpu.memory_space<vmem>>, %arg5: memref<128x128xbf16, #tpu.memory_space<vmem>>, %arg6: memref<1x128xf32, #tpu.memory_space<vmem>>, %arg7: memref<256x128xbf16, #tpu.memory_space<vmem>>, %arg8: memref<256x128xf32, #tpu.memory_space<vmem>>) attributes {dimension_semantics = [#tpu.dimension_semantics<parallel>, #tpu.dimension_semantics<arbitrary>], iteration_bounds = array<i64: 1, 1>, scalar_prefetch = 0 : i64, scratch_operands = 1 : i64, tpu.core_type = #tpu.core_type<tc>, window_params = [{transform_indices = @transform_0, window_bounds = array<i64: 256, 384>}, {transform_indices = @transform_1, window_bounds = array<i64: 384, 128>}, {transform_indices = @transform_2, window_bounds = array<i64: 256, 128>}, {pipeline_mode = #tpu.pipeline_mode<synchronous>, transform_indices = @transform_3, window_bounds = array<i64: 128, 128>}, {pipeline_mode = #tpu.pipeline_mode<synchronous>, transform_indices = @transform_4, window_bounds = array<i64: 1, 128>}, {transform_indices = @transform_5, window_bounds = array<i64: 256, 128>}]} {
    %c0_i32 = arith.constant 0 : i32
    %0 = arith.cmpi eq, %arg1, %c0_i32 : i32
    %1 = arith.extui %0 : i1 to i32
    %c0_i32_0 = arith.constant 0 : i32
    %2 = arith.cmpi ne, %1, %c0_i32_0 : i32
    scf.if %2 {
      %cst_10 = arith.constant 0.000000e+00 : f32
      %12 = vector.broadcast %cst_10 : f32 to vector<256x128xf32>
      %c0_11 = arith.constant 0 : index
      %c0_12 = arith.constant 0 : index
      %13 = vector.load %arg8[%c0_11, %c0_12] : memref<256x128xf32, #tpu.memory_space<vmem>>, vector<256x128xf32>
      tpu.vector_store %arg8[%c0_11, %c0_12], %12 {strides = array<i32>} : memref<256x128xf32, #tpu.memory_space<vmem>>, vector<256x128xf32>,
    } else {
    }
    %c0 = arith.constant 0 : index
    %c0_1 = arith.constant 0 : index
    %3 = vector.load %arg8[%c0, %c0_1] : memref<256x128xf32, #tpu.memory_space<vmem>>, vector<256x128xf32>
    %c0_2 = arith.constant 0 : index
    %c0_3 = arith.constant 0 : index
    %4 = vector.load %arg2[%c0_2, %c0_3] : memref<256x384xbf16, #tpu.memory_space<vmem>>, vector<256x384xbf16>
    %c0_4 = arith.constant 0 : index
    %c0_5 = arith.constant 0 : index
    %5 = vector.load %arg3[%c0_4, %c0_5] : memref<384x128xbf16, #tpu.memory_space<vmem>>, vector<384x128xbf16>
    %cst = arith.constant dense<0.000000e+00> : vector<256x128xf32>
    %6 = tpu.matmul %4, %5, %cst {dimension_numbers = #tpu.dot_dimension_numbers<[1], [0], [0], [1], [0, 0, 1, 1], [], []>} : vector<256x384xbf16>, vector<384x128xbf16>, vector<256x128xf32> -> vector<256x128xf32>
    %7 = arith.addf %3, %6 : vector<256x128xf32>
    %c0_6 = arith.constant 0 : index
    %c0_7 = arith.constant 0 : index
    %8 = vector.load %arg8[%c0_6, %c0_7] : memref<256x128xf32, #tpu.memory_space<vmem>>, vector<256x128xf32>
    tpu.vector_store %arg8[%c0_6, %c0_7], %7 {strides = array<i32>} : memref<256x128xf32, #tpu.memory_space<vmem>>, vector<256x128xf32>,
    %c0_i32_8 = arith.constant 0 : i32
    %9 = arith.cmpi eq, %arg1, %c0_i32_8 : i32
    %10 = arith.extui %9 : i1 to i32
    %c0_i32_9 = arith.constant 0 : i32
    %11 = arith.cmpi ne, %10, %c0_i32_9 : i32
    scf.if %11 {
      %c0_10 = arith.constant 0 : index
      %c0_11 = arith.constant 0 : index
      %12 = vector.load %arg4[%c0_10, %c0_11] : memref<256x128xf32, #tpu.memory_space<vmem>>, vector<256x128xf32>
      %c0_12 = arith.constant 0 : index
      %c0_13 = arith.constant 0 : index
      %13 = vector.load %arg8[%c0_12, %c0_13] : memref<256x128xf32, #tpu.memory_space<vmem>>, vector<256x128xf32>
      %14 = arith.mulf %12, %13 : vector<256x128xf32>
      %15 = arith.truncf %14 : vector<256x128xf32> to vector<256x128xbf16>
      %c0_14 = arith.constant 0 : index
      %c0_15 = arith.constant 0 : index
      %16 = vector.load %arg5[%c0_14, %c0_15] : memref<128x128xbf16, #tpu.memory_space<vmem>>, vector<128x128xbf16>
      %cst_16 = arith.constant dense<0.000000e+00> : vector<256x128xf32>
      %17 = tpu.matmul %15, %16, %cst_16 {dimension_numbers = #tpu.dot_dimension_numbers<[1], [0], [0], [1], [0, 0, 1, 1], [], []>} : vector<256x128xbf16>, vector<128x128xbf16>, vector<256x128xf32> -> vector<256x128xf32>
      %c0_17 = arith.constant 0 : index
      %c0_18 = arith.constant 0 : index
      %18 = vector.load %arg6[%c0_17, %c0_18] : memref<1x128xf32, #tpu.memory_space<vmem>>, vector<1x128xf32>
      %19 = vector.broadcast %18 : vector<1x128xf32> to vector<256x128xf32>
      %20 = arith.addf %17, %19 : vector<256x128xf32>
      %21 = arith.truncf %20 : vector<256x128xf32> to vector<256x128xbf16>
      %c0_19 = arith.constant 0 : index
      %c0_20 = arith.constant 0 : index
      %22 = vector.load %arg7[%c0_19, %c0_20] : memref<256x128xbf16, #tpu.memory_space<vmem>>, vector<256x128xbf16>
      tpu.vector_store %arg7[%c0_19, %c0_20], %21 {strides = array<i32>} : memref<256x128xbf16, #tpu.memory_space<vmem>>, vector<256x128xbf16>,
    } else {
    }
    return
  }
  func.func @transform_0(%arg0: i32, %arg1: i32) -> (i32, i32) {
    %c0_i32 = arith.constant 0 : i32
    return %arg0, %arg1 : i32, i32
  }
  func.func @transform_1(%arg0: i32, %arg1: i32) -> (i32, i32) {
    %c0_i32 = arith.constant 0 : i32
    %c0_i32_0 = arith.constant 0 : i32
    return %arg1, %c0_i32 : i32, i32
  }
  func.func @transform_2(%arg0: i32, %arg1: i32) -> (i32, i32) {
    %c0_i32 = arith.constant 0 : i32
    %c0_i32_0 = arith.constant 0 : i32
    return %arg0, %c0_i32 : i32, i32
  }
  func.func @transform_3(%arg0: i32, %arg1: i32) -> (i32, i32) {
    %c0_i32 = arith.constant 0 : i32
    %c0_i32_0 = arith.constant 0 : i32
    %c0_i32_1 = arith.constant 0 : i32
    return %c0_i32, %c0_i32_0 : i32, i32
  }
  func.func @transform_4(%arg0: i32, %arg1: i32) -> (i32, i32) {
    %c0_i32 = arith.constant 0 : i32
    %c0_i32_0 = arith.constant 0 : i32
    %c0_i32_1 = arith.constant 0 : i32
    return %c0_i32, %c0_i32_0 : i32, i32
  }
  func.func @transform_5(%arg0: i32, %arg1: i32) -> (i32, i32) {
    %c0_i32 = arith.constant 0 : i32
    %c0_i32_0 = arith.constant 0 : i32
    return %arg0, %c0_i32 : i32, i32
  }
}

</mosaic_0001>

<bundles_post_ra>
// kernel: tpu_custom_call.1
= control target key start
LH: loop header
LB: loop body
LE: loop exit
PB: predicated region body
PF: predicated region fallthrough
CT: control target
= control target key end

     0   :  { %10 = vsyncpa [#allocation4], 0  ;;  %s2491_s0 = inlined_call_operand.hbm [shape: bf16[256,384], index: 0, kind: input, shape index: {}]   ;;  %s2492_s1 = inlined_call_operand.hbm [shape: bf16[384,128], index: 1, kind: input, shape index: {}]   ;;  %s2493_s2 = inlined_call_operand.hbm [shape: f32[256,128], index: 2, kind: input, shape index: {}]   ;;  %s2494_s3 = inlined_call_operand.hbm [shape: bf16[128,128], index: 3, kind: input, shape index: {}]   ;;  %s2495_s4 = inlined_call_operand.vmem [shape: f32[1,128], index: 4, kind: input, shape index: {}]   ;;  %s2496_s5 = inlined_call_operand.hbm [shape: bf16[256,128], index: 5, kind: output, shape index: {}]  }
   0x1   :  { %11 = vsyncpa [#allocation7], 0 }
   0x2   :  { %12 = vsyncpa [#allocation10], 0 }
   0x3   :  { %13 = vsyncpa [#allocation5], 0  ;;  %s2290_s18 = smov [#allocation6]   ;;  %s2172_s22 = scalar_lea.hbm %s2492_s1, 3072 }
   0x4   :  { %s31_s19 = sshll.u32 %s2290_s18, 4  ;;  %p2173_p0 = scmp.ne.s32.totalorder %s2492_s1, %s2172_s22  ;;  %s32_s19 = int_to_ptr.vmem [resolvable:$true] %s31_s19 }
   0x5   :  { %p2176_p1 = scmp.lt.u32.totalorder %s2172_s22, %s2492_s1 }
   0x7   :  { %p2178_p2 = pnand %p2176_p1, %p2173_p0 }
   0x9   :  { %2181 = shalt.err (!%p2178_p2)
}
   0xa   :  { %s2182_s27 = scalar_lea.vmem %s32_s19, 3072  ;;  %p2187_p4 = scmp.lt.s32.totalorder %s32_s19, %s32_s19 }
   0xb   :  { %p2183_p3 = scmp.ne.s32.totalorder %s32_s19, %s2182_s27  ;;  %p2188_p5 = scmp.lt.s32.totalorder %s2182_s27, %s2182_s27 }
   0xd   :  { %p2189_p6 = por %p2188_p5, %p2187_p4 }
   0xf   :  { %p2190_p7 = pnand %p2189_p6, %p2183_p3 }
  0x11   :  { %2193 = shalt.err (!%p2190_p7)
}
  0x12   :  { %s2291_s28 = smov 64   ;;  %s2292_s29 = smov 4  }
  0x13   :  { %37 = dma.hbm_to_vmem [thread:$0]  %s2492_s1, 3072, %s32_s19, [#allocation7], %s2291_s28, %s2291_s28, %s2292_s29  }
  0x14   :  { %s2293_s7 = smov [#allocation3]   ;;  %s2194_s11 = scalar_lea.hbm %s2491_s0, 6144 }
  0x15   :  { %s19_s8 = sshll.u32 %s2293_s7, 4  ;;  %p2195_p8 = scmp.ne.s32.totalorder %s2491_s0, %s2194_s11  ;;  %s20_s8 = int_to_ptr.vmem [resolvable:$true] %s19_s8 }
  0x16   :  { %p2198_p9 = scmp.lt.u32.totalorder %s2194_s11, %s2491_s0 }
  0x18   :  { %p2200_p10 = pnand %p2198_p9, %p2195_p8 }
  0x1a   :  { %2203 = shalt.err (!%p2200_p10)
}
  0x1b   :  { %s2204_s16 = scalar_lea.vmem %s20_s8, 6144  ;;  %p2209_p12 = scmp.lt.s32.totalorder %s20_s8, %s20_s8 }
  0x1c   :  { %p2205_p11 = scmp.ne.s32.totalorder %s20_s8, %s2204_s16  ;;  %p2210_p13 = scmp.lt.s32.totalorder %s2204_s16, %s2204_s16 }
  0x1e   :  { %p2211_p0 = por %p2210_p13, %p2209_p12 }
  0x20   :  { %p2212_p1 = pnand %p2211_p0, %p2205_p11 }
  0x22   :  { %2215 = shalt.err (!%p2212_p1)
}
  0x23   :  { %s2294_s1 = smov 192   ;;  %s2295_s17 = smov 12  }
  0x24   :  { %25 = dma.hbm_to_vmem [thread:$0]  %s2491_s0, 6144, %s20_s8, [#allocation4], %s2294_s1, %s2294_s1, %s2295_s17  }
  0x25   :  { %s2296_s20 = smov [#allocation8]   ;;  %s2216_s24 = scalar_lea.hbm %s2493_s2, 4096 }
  0x26   :  { %s43_s21 = sshll.u32 %s2296_s20, 4  ;;  %p2217_p2 = scmp.ne.s32.totalorder %s2493_s2, %s2216_s24  ;;  %s44_s21 = int_to_ptr.vmem [resolvable:$true] %s43_s21 }
  0x27   :  { %p2220_p3 = scmp.lt.u32.totalorder %s2216_s24, %s2493_s2 }
  0x29   :  { %p2222_p4 = pnand %p2220_p3, %p2217_p2 }
  0x2b   :  { %2225 = shalt.err (!%p2222_p4)
}
  0x2c   :  { %s2226_s6 = scalar_lea.vmem %s44_s21, 4096  ;;  %p2231_p6 = scmp.lt.s32.totalorder %s44_s21, %s44_s21 }
  0x2d   :  { %p2227_p5 = scmp.ne.s32.totalorder %s44_s21, %s2226_s6  ;;  %p2232_p7 = scmp.lt.s32.totalorder %s2226_s6, %s2226_s6 }
  0x2f   :  { %p2233_p8 = por %p2232_p7, %p2231_p6 }
  0x31   :  { %p2234_p9 = pnand %p2233_p8, %p2227_p5 }
  0x33   :  { %2237 = shalt.err (!%p2234_p9)
}
  0x34   :  { %s2297_s0 = smov 128   ;;  %s2298_s7 = smov 8  }
  0x35   :  { %49 = dma.hbm_to_vmem [thread:$0]  %s2493_s2, 4096, %s44_s21, [#allocation7], %s2297_s0, %s2297_s0, %s2298_s7  }
  0x36   :  { %s2299_s10 = smov [#allocation9]   ;;  %s2238_s14 = scalar_lea.hbm %s2494_s3, 1024 }
  0x37   :  { %s55_s11 = sshll.u32 %s2299_s10, 4  ;;  %p2239_p10 = scmp.ne.s32.totalorder %s2494_s3, %s2238_s14  ;;  %s56_s11 = int_to_ptr.vmem [resolvable:$true] %s55_s11 }
  0x38   :  { %p2242_p11 = scmp.lt.u32.totalorder %s2238_s14, %s2494_s3 }
  0x3a   :  { %p2244_p12 = pnand %p2242_p11, %p2239_p10 }
  0x3c   :  { %2247 = shalt.err (!%p2244_p12)
}
  0x3d   :  { %s2248_s18 = scalar_lea.vmem %s56_s11, 1024  ;;  %p2253_p0 = scmp.lt.s32.totalorder %s56_s11, %s56_s11 }
  0x3e   :  { %p2249_p13 = scmp.ne.s32.totalorder %s56_s11, %s2248_s18  ;;  %p2254_p1 = scmp.lt.s32.totalorder %s2248_s18, %s2248_s18 }
  0x40   :  { %p2255_p2 = por %p2254_p1, %p2253_p0 }
  0x42   :  { %p2256_p3 = pnand %p2255_p2, %p2249_p13 }
  0x44   :  { %2259 = shalt.err (!%p2256_p3)
}
  0x45   :  { %61 = dma.hbm_to_vmem [thread:$0]  %s2494_s3, 1024, %s56_s11, [#allocation10], %s2291_s28, %s2291_s28, %s2292_s29  }
  0x46   :  { %2282 = dma.done.wait [#allocation4], 6144  }
  0x47   :  { %2283 = vsyncadd [#allocation4], 4294961152 }
  0x48   :  { %2284 = dma.done.wait [#allocation7], 7168  }
  0x49   :  { %2285 = vsyncadd [#allocation7], 4294960128 }
  0x4a   :  { %2286 = dma.done.wait [#allocation10], 1024  }
  0x4b   :  { %2287 = vsyncadd [#allocation10], 4294966272  ;;  %v2076_v0 = vld [vmem:[#allocation6 + $0x40] sm:$0xff]   ;;  %v2079_v3 = vld [vmem:[#allocation6 + $0x48] sm:$0xff]  }
  0x4c   :  { %v2077_v1 = vld [vmem:[#allocation6] sm:$0xff]   ;;  %1809 = vmatprep.subr.bf16.mxu0 %v2076_v0  ;;  %v2080_v4 = vld [vmem:[#allocation6 + $0x8] sm:$0xff]   ;;  %v2082_v6 = vld [vmem:[#allocation6 + $0x50] sm:$0xff]  }
  0x4d   :  { %v2078_v2 = vld [vmem:[#allocation6 + $0x80] sm:$0xff]   ;;  %1810 = vmatpush3.bf16.msra.mxu0 %v2077_v1  ;;  %v2081_v5 = vld [vmem:[#allocation6 + $0x88] sm:$0xff]   ;;  %v2083_v7 = vld [vmem:[#allocation6 + $0x10] sm:$0xff]  }
  0x4e   :  { %1969 = vmatprep.subr.bf16.mxu1 %v2078_v2  ;;  %1811 = vmatprep.subr.bf16.mxu0 %v2079_v3  ;;  %v2084_v8 = vld [vmem:[#allocation6 + $0x90] sm:$0xff]   ;;  %v2085_v9 = vld [vmem:[#allocation6 + $0x58] sm:$0xff]   ;;  %v2088_v12 = vld [vmem:[#allocation6 + $0x60] sm:$0xff]  }
  0x4f   :  { %1970 = vmatpush3.bf16.msra.mxu1 %v2078_v2  ;;  %v2086_v10 = vld [vmem:[#allocation6 + $0x18] sm:$0xff]   ;;  %v2090_v13 = vld [vmem:[#allocation6 + $0xa0] sm:$0xff]   ;;  %v2091_v15 = vld [vmem:[#allocation6 + $0x68] sm:$0xff]  }
  0x50   :  { %1971 = vmatprep.subr.bf16.mxu1 %v2081_v5  ;;  %v2087_v11 = vld [vmem:[#allocation6 + $0x98] sm:$0xff]   ;;  %v2089_v14 = vld [vmem:[#allocation6 + $0x20] sm:$0xff]   ;;  %v2093_v16 = vld [vmem:[#allocation6 + $0xa8] sm:$0xff]  }
  0x51   :  { %1812 = vmatpush3.bf16.msra.mxu0 %v2080_v4  ;;  %v2092_v17 = vld [vmem:[#allocation6 + $0x28] sm:$0xff]   ;;  %v2094_v18 = vld [vmem:[#allocation6 + $0x70] sm:$0xff]   ;;  %v2097_v21 = vld [vmem:[#allocation6 + $0x78] sm:$0xff]  }
  0x52   :  { %1813 = vmatprep.subr.bf16.mxu0 %v2082_v6  ;;  %v2095_v19 = vld [vmem:[#allocation6 + $0x30] sm:$0xff]   ;;  %v2099_v22 = vld [vmem:[#allocation6 + $0xb8] sm:$0xff]   ;;  %v2100_v26 = vld [vmem:[#allocation3] ss:$12 sps:$4 sm:$0xff]  }
  0x53   :  { %1972 = vmatpush3.bf16.msra.mxu1 %v2081_v5  ;;  %v2096_v20 = vld [vmem:[#allocation6 + $0xb0] sm:$0xff]   ;;  %v2098_v25 = vld [vmem:[#allocation6 + $0x38] sm:$0xff]   ;;  %v2104_v28 = vld [vmem:[#allocation3 + $0x20] ss:$12 sps:$4 sm:$0xff]  }
  0x54   :  { %1973 = vmatprep.subr.bf16.mxu1 %v2084_v8  ;;  %v2102_v23 = vld [vmem:[#allocation3 + $0x4] ss:$12 sps:$4 sm:$0xff]   ;;  %v2103_v24 = vld [vmem:[#allocation3 + $0x8] ss:$12 sps:$4 sm:$0xff]   ;;  %v2113_v35 = vld [vmem:[#allocation3 + $0x4c] ss:$12 sps:$4 sm:$0xff]  }
  0x55   :  { %1814 = vmatpush3.bf16.msra.mxu0 %v2083_v7  ;;  %689 = vmatprep.mubr.bf16.mxu0 %v2102_v23  ;;  %v2105_v27 = vld [vmem:[#allocation3 + $0x1c] ss:$12 sps:$4 sm:$0xff]   ;;  %v2111_v29 = vld [vmem:[#allocation3 + $0x38] ss:$12 sps:$4 sm:$0xff]   ;;  %v2108_v31 = vld [vmem:[#allocation3 + $0x34] ss:$12 sps:$4 sm:$0xff]  }
  0x56   :  { %1815 = vmatprep.subr.bf16.mxu0 %v2085_v9  ;;  %1985 = vmatprep.mubr.bf16.mxu1 %v2103_v24  ;;  %v2107_v30 = vld [vmem:[#allocation3 + $0x18] ss:$12 sps:$4 sm:$0xff]   ;;  %v2112_v32 = vld [vmem:[#allocation3 + $0x50] ss:$12 sps:$4 sm:$0xff]   ;;  %v2119_v33 = vld [vmem:[#allocation3 + $0x68] ss:$12 sps:$4 sm:$0xff]  }
  0x57   :  { %1974 = vmatpush3.bf16.msra.mxu1 %v2084_v8  ;;  %v2110_v34 = vld [vmem:[#allocation3 + $0x30] ss:$12 sps:$4 sm:$0xff]   ;;  %v2120_v36 = vld [vmem:[#allocation3 + $0x80] ss:$12 sps:$4 sm:$0xff]   ;;  %v2127_v37 = vld [vmem:[#allocation3 + $0x98] ss:$12 sps:$4 sm:$0xff]  }
  0x58   :  { %1975 = vmatprep.subr.bf16.mxu1 %v2087_v11  ;;  %v2115_v38 = vld [vmem:[#allocation3 + $0x48] ss:$12 sps:$4 sm:$0xff]   ;;  %v2116_v39 = vld [vmem:[#allocation3 + $0x64] ss:$12 sps:$4 sm:$0xff]   ;;  %v2118_v42 = vld [vmem:[#allocation3 + $0x60] ss:$12 sps:$4 sm:$0xff]  }
  0x59   :  { %1816 = vmatpush3.bf16.msra.mxu0 %v2086_v10  ;;  %v2128_v40 = vld [vmem:[#allocation3 + $0xb0] ss:$12 sps:$4 sm:$0xff]   ;;  %v2135_v41 = vld [vmem:[#allocation3 + $0xc8] ss:$12 sps:$4 sm:$0xff]   ;;  %v2136_v44 = vld [vmem:[#allocation3 + $0xe0] ss:$12 sps:$4 sm:$0xff]  }
  0x5a   :  { %1817 = vmatprep.subr.bf16.mxu0 %v2088_v12  ;;  %v2121_v43 = vld [vmem:[#allocation3 + $0x7c] ss:$12 sps:$4 sm:$0xff]   ;;  %v2164_v45 = vld [vmem:[#allocation9] sm:$0xff]   ;;  %v2166_v48 = vld [vmem:[#allocation9 + $0x10] sm:$0xff]  }
  0x5b   :  { %1976 = vmatpush3.bf16.msra.mxu1 %v2087_v11  ;;  %v2143_v46 = vld [vmem:[#allocation3 + $0xf8] ss:$12 sps:$4 sm:$0xff]   ;;  %v2165_v47 = vld [vmem:[#allocation9 + $0x8] sm:$0xff]   ;;  %v2124_v50 = vld [vmem:[#allocation3 + $0x94] ss:$12 sps:$4 sm:$0xff]  }
  0x5c   :  { %1977 = vmatprep.subr.bf16.mxu1 %v2090_v13  ;;  %v2123_v49 = vld [vmem:[#allocation3 + $0x78] ss:$12 sps:$4 sm:$0xff]   ;;  %v2144_v51 = vld [vmem:[#allocation3 + $0x110] ss:$12 sps:$4 sm:$0xff]   ;;  %v2151_v52 = vld [vmem:[#allocation3 + $0x128] ss:$12 sps:$4 sm:$0xff]  }
  0x5d   :  { %1818 = vmatpush3.bf16.msra.mxu0 %v2089_v14  ;;  %v2126_v53 = vld [vmem:[#allocation3 + $0x90] ss:$12 sps:$4 sm:$0xff]   ;;  %v2129_v54 = vld [vmem:[#allocation3 + $0xac] ss:$12 sps:$4 sm:$0xff]   ;;  %v2131_v57 = vld [vmem:[#allocation3 + $0xa8] ss:$12 sps:$4 sm:$0xff]  }
  0x5e   :  { %1819 = vmatprep.subr.bf16.mxu0 %v2091_v15  ;;  %v2152_v55 = vld [vmem:[#allocation3 + $0x140] ss:$12 sps:$4 sm:$0xff]   ;;  %v2159_v56 = vld [vmem:[#allocation3 + $0x158] ss:$12 sps:$4 sm:$0xff]   ;;  %v2160_v59 = vld [vmem:[#allocation3 + $0x170] ss:$12 sps:$4 sm:$0xff]  }
  0x5f   :  { %1978 = vmatpush3.bf16.msra.mxu1 %v2090_v13  ;;  %v2132_v58 = vld [vmem:[#allocation3 + $0xc4] ss:$12 sps:$4 sm:$0xff]   ;;  %v2134_v60 = vld [vmem:[#allocation3 + $0xc0] ss:$12 sps:$4 sm:$0xff]   ;;  %v2137_v61 = vld [vmem:[#allocation3 + $0xdc] ss:$12 sps:$4 sm:$0xff]  }
  0x60   :  { %1979 = vmatprep.subr.bf16.mxu1 %v2093_v16  ;;  %v2139_v62 = vld [vmem:[#allocation3 + $0xd8] ss:$12 sps:$4 sm:$0xff]   ;;  %v2140_v63 = vld [vmem:[#allocation3 + $0xf4] ss:$12 sps:$4 sm:$0xff]   ;;  %v2142_v0 = vld [vmem:[#allocation3 + $0xf0] ss:$12 sps:$4 sm:$0xff]  }
  0x61   :  { %1820 = vmatpush3.bf16.msra.mxu0 %v2092_v17  ;;  %v2145_v1 = vld [vmem:[#allocation3 + $0x10c] ss:$12 sps:$4 sm:$0xff]   ;;  %v2147_v3 = vld [vmem:[#allocation3 + $0x108] ss:$12 sps:$4 sm:$0xff]   ;;  %v2148_v4 = vld [vmem:[#allocation3 + $0x124] ss:$12 sps:$4 sm:$0xff]  }
  0x62   :  { %1821 = vmatprep.subr.bf16.mxu0 %v2094_v18  ;;  %v2167_v2 = vld [vmem:[#allocation9 + $0x18] sm:$0xff]   ;;  %v2168_v5 = vld [vmem:[#allocation9 + $0x20] sm:$0xff]   ;;  %v2169_v6 = vld [vmem:[#allocation9 + $0x28] sm:$0xff]  }
  0x63   :  { %1980 = vmatpush3.bf16.msra.mxu1 %v2093_v16  ;;  %v2150_v7 = vld [vmem:[#allocation3 + $0x120] ss:$12 sps:$4 sm:$0xff]   ;;  %v2153_v8 = vld [vmem:[#allocation3 + $0x13c] ss:$12 sps:$4 sm:$0xff]   ;;  %v2170_v9 = vld [vmem:[#allocation9 + $0x30] sm:$0xff]  }
  0x64   :  { %1981 = vmatprep.subr.bf16.mxu1 %v2096_v20  ;;  %v2171_v10 = vld [vmem:[#allocation9 + $0x38] sm:$0xff]   ;;  %v2156_v12 = vld [vmem:[#allocation3 + $0x154] ss:$12 sps:$4 sm:$0xff]  }
  0x65   :  { %1822 = vmatpush3.bf16.msra.mxu0 %v2095_v19  ;;  %v2155_v11 = vld [vmem:[#allocation3 + $0x138] ss:$12 sps:$4 sm:$0xff]   ;;  %v2158_v13 = vld [vmem:[#allocation3 + $0x150] ss:$12 sps:$4 sm:$0xff]   ;;  %v2163_v15 = vld [vmem:[#allocation3 + $0x168] ss:$12 sps:$4 sm:$0xff]  }
  0x66   :  { %1823 = vmatprep.subr.bf16.mxu0 %v2097_v21  ;;  %v2161_v14 = vld [vmem:[#allocation3 + $0x16c] ss:$12 sps:$4 sm:$0xff]  }
  0x67   :  { %1982 = vmatpush3.bf16.msra.mxu1 %v2096_v20 }
  0x68   :  { %1983 = vmatprep.subr.bf16.mxu1 %v2099_v22 }
  0x69   :  { %1824 = vmatpush3.bf16.msra.mxu0 %v2098_v25 }
  0x6b   :  { %1984 = vmatpush3.bf16.msra.mxu1 %v2099_v22 }
  0x6c   :  { %690 = vmatmul.mubr.bf16.vlgmr.msra.gmra.mrb[0].mxu0 %v2100_v26  ;;  %2017 = vmatprep.subr.bf16.mxu1 %v2164_v45  ;;  %v1046_v26 = vld [vmem:[#allocation8] sm:$0xff] }
  0x6d   :  { %697 = vmatprep.mubr.bf16.mxu0 %v2105_v27 }
  0x6e   :  { %1986 = vmatmul.mubr.bf16.vlgmr.msra.gmra.mrb[0].mxu1 %v2104_v28  ;;  %v1047_v28 = vld [vmem:[#allocation8 + $0x8] sm:$0xff] }
  0x6f   :  { %1989 = vmatprep.mubr.bf16.mxu1 %v2111_v29  ;;  %2018 = vmatpush3.bf16.msra.mxu1 %v2164_v45 }
  0x70   :  { %2019 = vmatprep.subr.bf16.mxu1 %v2165_v47 }
  0x73   :  { %2020 = vmatpush3.bf16.msra.mxu1 %v2165_v47 }
  0x74   :  { %698 = vmatmul.mubr.bf16.gmra.mrb[4].mxu0 %v2107_v30  ;;  %2021 = vmatprep.subr.bf16.mxu1 %v2166_v48 }
  0x75   :  { %705 = vmatprep.mubr.bf16.mxu0 %v2108_v31 }
  0x76   :  { %1990 = vmatmul.mubr.bf16.gmra.mrb[4].mxu1 %v2112_v32 }
  0x77   :  { %1993 = vmatprep.mubr.bf16.mxu1 %v2119_v33  ;;  %2022 = vmatpush3.bf16.msra.mxu1 %v2166_v48 }
  0x78   :  { %2023 = vmatprep.subr.bf16.mxu1 %v2167_v2 }
  0x7b   :  { %2024 = vmatpush3.bf16.msra.mxu1 %v2167_v2 }
  0x7c   :  { %706 = vmatmul.mubr.bf16.gmra.mrb[8].mxu0 %v2110_v34  ;;  %2025 = vmatprep.subr.bf16.mxu1 %v2168_v5 }
  0x7d   :  { %713 = vmatprep.mubr.bf16.mxu0 %v2113_v35 }
  0x7e   :  { %1994 = vmatmul.mubr.bf16.gmra.mrb[8].mxu1 %v2120_v36 }
  0x7f   :  { %1997 = vmatprep.mubr.bf16.mxu1 %v2127_v37  ;;  %2026 = vmatpush3.bf16.msra.mxu1 %v2168_v5 }
  0x80   :  { %2027 = vmatprep.subr.bf16.mxu1 %v2169_v6 }
  0x83   :  { %2028 = vmatpush3.bf16.msra.mxu1 %v2169_v6 }
  0x84   :  { %714 = vmatmul.mubr.bf16.gmra.mrb[12].mxu0 %v2115_v38  ;;  %2029 = vmatprep.subr.bf16.mxu1 %v2170_v9 }
  0x85   :  { %721 = vmatprep.mubr.bf16.mxu0 %v2116_v39 }
  0x86   :  { %1998 = vmatmul.mubr.bf16.gmra.mrb[12].mxu1 %v2128_v40 }
  0x87   :  { %2001 = vmatprep.mubr.bf16.mxu1 %v2135_v41  ;;  %2030 = vmatpush3.bf16.msra.mxu1 %v2170_v9 }
  0x88   :  { %2031 = vmatprep.subr.bf16.mxu1 %v2171_v10 }
  0x8b   :  { %2032 = vmatpush3.bf16.msra.mxu1 %v2171_v10 }
  0x8c   :  { %722 = vmatmul.mubr.bf16.gmra.mrb[16].mxu0 %v2118_v42 }
  0x8d   :  { %729 = vmatprep.mubr.bf16.mxu0 %v2121_v43  ;;  %v1048_v43 = vld [vmem:[#allocation8 + $0x10] sm:$0xff] }
  0x8e   :  { %2002 = vmatmul.mubr.bf16.gmra.mrb[16].mxu1 %v2136_v44  ;;  %v1049_v44 = vld [vmem:[#allocation8 + $0x18] sm:$0xff] }
  0x8f   :  { %2005 = vmatprep.mubr.bf16.mxu1 %v2143_v46 }
  0x94   :  { %730 = vmatmul.mubr.bf16.gmra.mrb[20].mxu0 %v2123_v49 }
  0x95   :  { %737 = vmatprep.mubr.bf16.mxu0 %v2124_v50 }
  0x96   :  { %2006 = vmatmul.mubr.bf16.gmra.mrb[20].mxu1 %v2144_v51 }
  0x97   :  { %2009 = vmatprep.mubr.bf16.mxu1 %v2151_v52 }
  0x9c   :  { %738 = vmatmul.mubr.bf16.gmra.mrb[24].mxu0 %v2126_v53 }
  0x9d   :  { %745 = vmatprep.mubr.bf16.mxu0 %v2129_v54 }
  0x9e   :  { %2010 = vmatmul.mubr.bf16.gmra.mrb[24].mxu1 %v2152_v55 }
  0x9f   :  { %2013 = vmatprep.mubr.bf16.mxu1 %v2159_v56 }
  0xa4   :  { %746 = vmatmul.mubr.bf16.gmra.mrb[28].mxu0 %v2131_v57 }
  0xa5   :  { %753 = vmatprep.mubr.bf16.mxu0 %v2132_v58 }
  0xa6   :  { %2014 = vmatmul.mubr.bf16.gmra.mrb[28].mxu1 %v2160_v59 }
  0xac   :  { %754 = vmatmul.mubr.bf16.gmra.mrb[32].mxu0 %v2134_v60  ;;  %v1050_v60 = vld [vmem:[#allocation8 + $0x20] sm:$0xff] }
  0xad   :  { %761 = vmatprep.mubr.bf16.mxu0 %v2137_v61  ;;  %v1051_v61 = vld [vmem:[#allocation8 + $0x28] sm:$0xff] }
  0xb4   :  { %762 = vmatmul.mubr.bf16.gmra.mrb[36].mxu0 %v2139_v62 }
  0xb5   :  { %769 = vmatprep.mubr.bf16.mxu0 %v2140_v63 }
  0xbc   :  { %770 = vmatmul.mubr.bf16.gmra.mrb[40].mxu0 %v2142_v0 }
  0xbd   :  { %777 = vmatprep.mubr.bf16.mxu0 %v2145_v1 }
  0xc4   :  { %778 = vmatmul.mubr.bf16.gmra.mrb[44].mxu0 %v2147_v3 }
  0xc5   :  { %785 = vmatprep.mubr.bf16.mxu0 %v2148_v4 }
  0xcc   :  { %786 = vmatmul.mubr.bf16.gmra.mrb[48].mxu0 %v2150_v7 }
  0xcd   :  { %793 = vmatprep.mubr.bf16.mxu0 %v2153_v8 }
  0xd4   :  { %794 = vmatmul.mubr.bf16.gmra.mrb[52].mxu0 %v2155_v11 }
  0xd5   :  { %801 = vmatprep.mubr.bf16.mxu0 %v2156_v12 }
  0xdc   :  { %802 = vmatmul.mubr.bf16.gmra.mrb[56].mxu0 %v2158_v13  ;;  %v1052_v13 = vld [vmem:[#allocation8 + $0x30] sm:$0xff] }
  0xdd   :  { %809 = vmatprep.mubr.bf16.mxu0 %v2161_v14  ;;  %v1053_v14 = vld [vmem:[#allocation8 + $0x38] sm:$0xff] }
  0xe4   :  { %810 = vmatmul.mubr.bf16.gmra.mrb[60].mxu0 %v2163_v15 }
 0x13f   :  { %v1825_v16 = vpop.f32.mrb[0].mxu0 }
 0x140   :  { %v1826_v17 = vpop.f32.mrb[1].mxu0 }
 0x141   :  { %v1827_v18 = vadd.f32 %v1826_v17, %v1825_v16  ;;  %v1828_v19 = vpop.f32.mrb[2].mxu0  ;;  %v1987_v20 = vpop.f32.mrb[0].mxu1 }
 0x142   :  { %v1829_v21 = vpop.f32.mrb[3].mxu0  ;;  %v852_v22 = vpop.f32.mrb[1].mxu1 }
 0x143   :  { %v1830_v23 = vadd.f32 %v1829_v21, %v1828_v19  ;;  %v853_v24 = vadd.f32 %v1827_v18, %v852_v22  ;;  %v1988_v25 = vpop.f32.mrb[2].mxu1 }
 0x144   :  { %v855_v27 = vpop.f32.mrb[3].mxu1 }
 0x145   :  { %v856_v29 = vadd.f32 %v1830_v23, %v855_v27  ;;  %v1110_v30 = vmul.f32 %v1046_v26, %v853_v24 }
 0x147   :  { %v1111_v31 = vmul.f32 %v1047_v28, %v856_v29  ;;  %v1831_v32 = vpop.f32.mrb[4].mxu0 }
 0x148   :  { %v1832_v33 = vpop.f32.mrb[5].mxu0 }
 0x149   :  { %v1833_v34 = vadd.f32 %v1832_v33, %v1831_v32  ;;  %v1834_v35 = vpop.f32.mrb[6].mxu0  ;;  %v1142_v36 = vpack.c.bf16 %v1111_v31, %v1110_v30  ;;  %v1991_v37 = vpop.f32.mrb[4].mxu1  ;;  %v1054_v30 = vld [vmem:[#allocation8 + $0x40] sm:$0xff]  ;;  %v1055_v31 = vld [vmem:[#allocation8 + $0x48] sm:$0xff] }
 0x14a   :  { %v1835_v38 = vpop.f32.mrb[7].mxu0  ;;  %v868_v39 = vpop.f32.mrb[5].mxu1 }
 0x14b   :  { %v861_v40 = vadd.f32 %v1987_v20, %v1833_v34  ;;  %v1836_v41 = vadd.f32 %v1835_v38, %v1834_v35  ;;  %2033 = vmatprep.mubr.bf16.mxu1 %v1142_v36  ;;  %v1992_v42 = vpop.f32.mrb[6].mxu1 }
 0x14c   :  { %v871_v45 = vpop.f32.mrb[7].mxu1 }
 0x14d   :  { %v864_v46 = vadd.f32 %v1988_v25, %v1836_v41  ;;  %v1112_v47 = vmul.f32 %v1048_v43, %v861_v40 }
 0x14f   :  { %v1113_v48 = vmul.f32 %v1049_v44, %v864_v46  ;;  %v1837_v49 = vpop.f32.mrb[8].mxu0 }
 0x150   :  { %v1838_v50 = vpop.f32.mrb[9].mxu0 }
 0x151   :  { %v1143_v51 = vpack.c.bf16 %v1113_v48, %v1112_v47  ;;  %v1839_v52 = vadd.f32 %v1838_v50, %v1837_v49  ;;  %v1840_v53 = vpop.f32.mrb[10].mxu0  ;;  %v1995_v54 = vpop.f32.mrb[8].mxu1  ;;  %v1056_v47 = vld [vmem:[#allocation8 + $0x50] sm:$0xff]  ;;  %v1057_v48 = vld [vmem:[#allocation8 + $0x58] sm:$0xff] }
 0x152   :  { %v1841_v55 = vpop.f32.mrb[11].mxu0  ;;  %v884_v56 = vpop.f32.mrb[9].mxu1 }
 0x153   :  { %v1842_v57 = vadd.f32 %v1841_v55, %v1840_v53  ;;  %v869_v58 = vadd.f32 %v1839_v52, %v868_v39  ;;  %2034 = vmatmul.mubr.bf16.vlgmr.msra.gmra.mrb[32].mxu1 %v1143_v51  ;;  %v1996_v59 = vpop.f32.mrb[10].mxu1 }
 0x154   :  { %v887_v62 = vpop.f32.mrb[11].mxu1 }
 0x155   :  { %v872_v63 = vadd.f32 %v1842_v57, %v871_v45  ;;  %v1114_v0 = vmul.f32 %v1050_v60, %v869_v58 }
 0x157   :  { %v1115_v1 = vmul.f32 %v1051_v61, %v872_v63  ;;  %v1843_v2 = vpop.f32.mrb[12].mxu0 }
 0x158   :  { %v1844_v3 = vpop.f32.mrb[13].mxu0 }
 0x159   :  { %v1845_v4 = vadd.f32 %v1844_v3, %v1843_v2  ;;  %v1846_v5 = vpop.f32.mrb[14].mxu0  ;;  %v1144_v6 = vpack.c.bf16 %v1115_v1, %v1114_v0  ;;  %v2385_v7 = vpop.f32.mrb[12].mxu1  ;;  %v1058_v1 = vld [vmem:[#allocation8 + $0x60] sm:$0xff]  ;;  %v1059_v2 = vld [vmem:[#allocation8 + $0x68] sm:$0xff] }
 0x15a   :  { %v1847_v8 = vpop.f32.mrb[15].mxu0  ;;  %v900_v9 = vpop.f32.mrb[13].mxu1 }
 0x15b   :  { %v877_v10 = vadd.f32 %v1991_v37, %v1845_v4  ;;  %v1848_v11 = vadd.f32 %v1847_v8, %v1846_v5  ;;  %2037 = vmatprep.mubr.bf16.mxu1 %v1144_v6  ;;  %v2387_v12 = vpop.f32.mrb[14].mxu1 }
 0x15c   :  { %v903_v15 = vpop.f32.mrb[15].mxu1 }
 0x15d   :  { %v880_v16 = vadd.f32 %v1992_v42, %v1848_v11  ;;  %v1116_v17 = vmul.f32 %v1052_v13, %v877_v10 }
 0x15f   :  { %v1117_v18 = vmul.f32 %v1053_v14, %v880_v16  ;;  %v1849_v19 = vpop.f32.mrb[16].mxu0 }
 0x160   :  { %v1850_v20 = vpop.f32.mrb[17].mxu0 }
 0x161   :  { %v1851_v21 = vadd.f32 %v1850_v20, %v1849_v19  ;;  %v1852_v22 = vpop.f32.mrb[18].mxu0  ;;  %v1145_v23 = vpack.c.bf16 %v1117_v18, %v1116_v17  ;;  %v2389_v24 = vpop.f32.mrb[16].mxu1  ;;  %v1060_v20 = vld [vmem:[#allocation8 + $0x70] sm:$0xff] }
 0x162   :  { %v1853_v25 = vpop.f32.mrb[19].mxu0  ;;  %v2391_v26 = vpop.f32.mrb[17].mxu1 }
 0x163   :  { %v1854_v27 = vadd.f32 %v1853_v25, %v1852_v22  ;;  %v885_v28 = vadd.f32 %v1851_v21, %v884_v56  ;;  %2038 = vmatmul.mubr.bf16.gmra.mrb[36].mxu1 %v1145_v23  ;;  %v2393_v29 = vpop.f32.mrb[18].mxu1 }
 0x164   :  { %v2395_v32 = vpop.f32.mrb[19].mxu1 }
 0x165   :  { %v888_v33 = vadd.f32 %v1854_v27, %v887_v62  ;;  %v1118_v34 = vmul.f32 %v1054_v30, %v885_v28 }
 0x167   :  { %v1119_v35 = vmul.f32 %v1055_v31, %v888_v33  ;;  %v1855_v36 = vpop.f32.mrb[20].mxu0 }
 0x168   :  { %v1856_v37 = vpop.f32.mrb[21].mxu0 }
 0x169   :  { %v1857_v38 = vadd.f32 %v1856_v37, %v1855_v36  ;;  %v1858_v39 = vpop.f32.mrb[22].mxu0  ;;  %v1146_v40 = vpack.c.bf16 %v1119_v35, %v1118_v34  ;;  %v2397_v41 = vpop.f32.mrb[20].mxu1  ;;  %v1062_v36 = vld [vmem:[#allocation8 + $0x80] sm:$0xff]  ;;  %v1063_v37 = vld [vmem:[#allocation8 + $0x88] sm:$0xff] }
 0x16a   :  { %v1859_v42 = vpop.f32.mrb[23].mxu0  ;;  %v2399_v43 = vpop.f32.mrb[21].mxu1 }
 0x16b   :  { %v893_v44 = vadd.f32 %v1995_v54, %v1857_v38  ;;  %v1860_v45 = vadd.f32 %v1859_v42, %v1858_v39  ;;  %2041 = vmatprep.mubr.bf16.mxu1 %v1146_v40  ;;  %v2401_v46 = vpop.f32.mrb[22].mxu1 }
 0x16c   :  { %v2403_v49 = vpop.f32.mrb[23].mxu1 }
 0x16d   :  { %v896_v50 = vadd.f32 %v1996_v59, %v1860_v45  ;;  %v1120_v51 = vmul.f32 %v1056_v47, %v893_v44 }
 0x16f   :  { %v1121_v52 = vmul.f32 %v1057_v48, %v896_v50  ;;  %v1861_v53 = vpop.f32.mrb[24].mxu0 }
 0x170   :  { %v1862_v55 = vpop.f32.mrb[25].mxu0 }
 0x171   :  { %v1863_v56 = vadd.f32 %v1862_v55, %v1861_v53  ;;  %v1864_v57 = vpop.f32.mrb[26].mxu0  ;;  %v1147_v58 = vpack.c.bf16 %v1121_v52, %v1120_v51  ;;  %v2405_v60 = vpop.f32.mrb[24].mxu1  ;;  %v1064_v52 = vld [vmem:[#allocation8 + $0x90] sm:$0xff]  ;;  %v1065_v53 = vld [vmem:[#allocation8 + $0x98] sm:$0xff] }
 0x172   :  { %v1865_v61 = vpop.f32.mrb[27].mxu0  ;;  %v2407_v54 = vpop.f32.mrb[25].mxu1 }
 0x173   :  { %v1866_v62 = vadd.f32 %v1865_v61, %v1864_v57  ;;  %v901_v63 = vadd.f32 %v1863_v56, %v900_v9  ;;  %2042 = vmatmul.mubr.bf16.gmra.mrb[40].mxu1 %v1147_v58  ;;  %v2409_v0 = vpop.f32.mrb[26].mxu1 }
 0x174   :  { %v2411_v59 = vpop.f32.mrb[27].mxu1 }
 0x175   :  { %v904_v3 = vadd.f32 %v1866_v62, %v903_v15  ;;  %v1122_v4 = vmul.f32 %v1058_v1, %v901_v63  ;;  %v1061_v15 = vld [vmem:[#allocation8 + $0x78] sm:$0xff] }
 0x177   :  { %v1123_v5 = vmul.f32 %v1059_v2, %v904_v3  ;;  %v1867_v6 = vpop.f32.mrb[28].mxu0  ;;  %v1066_v3 = vld [vmem:[#allocation8 + $0xa0] sm:$0xff] }
 0x178   :  { %v1868_v8 = vpop.f32.mrb[29].mxu0 }
 0x179   :  { %v1869_v10 = vadd.f32 %v1868_v8, %v1867_v6  ;;  %v1870_v11 = vpop.f32.mrb[30].mxu0  ;;  %v1148_v13 = vpack.c.bf16 %v1123_v5, %v1122_v4  ;;  %v2413_v14 = vpop.f32.mrb[28].mxu1 }
 0x17a   :  { %v1871_v16 = vpop.f32.mrb[31].mxu0  ;;  %v2415_v17 = vpop.f32.mrb[29].mxu1 }
 0x17b   :  { %v909_v9 = vadd.f32 %v2385_v7, %v1869_v10  ;;  %v1872_v18 = vadd.f32 %v1871_v16, %v1870_v11  ;;  %2045 = vmatprep.mubr.bf16.mxu1 %v1148_v13  ;;  %v2418_v19 = vpop.f32.mrb[30].mxu1 }
 0x17c   :  { %v2420_v21 = vpop.f32.mrb[31].mxu1 }
 0x17d   :  { %v912_v22 = vadd.f32 %v2387_v12, %v1872_v18  ;;  %v1124_v23 = vmul.f32 %v1060_v20, %v909_v9  ;;  %v1068_v20 = vld [vmem:[#allocation8 + $0xb0] sm:$0xff] }
 0x17f   :  { %v1125_v25 = vmul.f32 %v1061_v15, %v912_v22  ;;  %v1873_v27 = vpop.f32.mrb[32].mxu0  ;;  %v1069_v15 = vld [vmem:[#allocation8 + $0xb8] sm:$0xff] }
 0x180   :  { %v1874_v28 = vpop.f32.mrb[33].mxu0 }
 0x181   :  { %v1875_v30 = vadd.f32 %v1874_v28, %v1873_v27  ;;  %v1876_v31 = vpop.f32.mrb[34].mxu0  ;;  %v1149_v33 = vpack.c.bf16 %v1125_v25, %v1124_v23 }
 0x182   :  { %v1877_v34 = vpop.f32.mrb[35].mxu0 }
 0x183   :  { %v1878_v35 = vadd.f32 %v1877_v34, %v1876_v31  ;;  %v917_v7 = vadd.f32 %v1875_v30, %v2391_v26  ;;  %2046 = vmatmul.mubr.bf16.gmra.mrb[44].mxu1 %v1149_v33 }
 0x185   :  { %v920_v38 = vadd.f32 %v1878_v35, %v2395_v32  ;;  %v1126_v39 = vmul.f32 %v1062_v36, %v917_v7  ;;  %v1070_v35 = vld [vmem:[#allocation8 + $0xc0] sm:$0xff] }
 0x187   :  { %v1127_v40 = vmul.f32 %v1063_v37, %v920_v38  ;;  %v1879_v42 = vpop.f32.mrb[36].mxu0 }
 0x188   :  { %v1880_v12 = vpop.f32.mrb[37].mxu0 }
 0x189   :  { %v1881_v44 = vadd.f32 %v1880_v12, %v1879_v42  ;;  %v1882_v45 = vpop.f32.mrb[38].mxu0  ;;  %v1150_v47 = vpack.c.bf16 %v1127_v40, %v1126_v39 }
 0x18a   :  { %v1883_v48 = vpop.f32.mrb[39].mxu0 }
 0x18b   :  { %v925_v50 = vadd.f32 %v2389_v24, %v1881_v44  ;;  %v1884_v51 = vadd.f32 %v1883_v48, %v1882_v45  ;;  %2049 = vmatprep.mubr.bf16.mxu1 %v1150_v47  ;;  %v1067_v24 = vld [vmem:[#allocation8 + $0xa8] sm:$0xff]  ;;  %v1072_v47 = vld [vmem:[#allocation8 + $0xd0] sm:$0xff]  ;;  %v1073_v48 = vld [vmem:[#allocation8 + $0xd8] sm:$0xff] }
 0x18d   :  { %v928_v26 = vadd.f32 %v2393_v29, %v1884_v51  ;;  %v1128_v55 = vmul.f32 %v1064_v52, %v925_v50 }
 0x18f   :  { %v1129_v56 = vmul.f32 %v1065_v53, %v928_v26  ;;  %v1885_v57 = vpop.f32.mrb[40].mxu0 }
 0x190   :  { %v1886_v32 = vpop.f32.mrb[41].mxu0 }
 0x191   :  { %v1887_v58 = vadd.f32 %v1886_v32, %v1885_v57  ;;  %v1888_v61 = vpop.f32.mrb[42].mxu0  ;;  %v1151_v62 = vpack.c.bf16 %v1129_v56, %v1128_v55 }
 0x192   :  { %v1889_v63 = vpop.f32.mrb[43].mxu0 }
 0x193   :  { %v1890_v1 = vadd.f32 %v1889_v63, %v1888_v61  ;;  %v933_v2 = vadd.f32 %v1887_v58, %v2399_v43  ;;  %2050 = vmatmul.mubr.bf16.gmra.mrb[48].mxu1 %v1151_v62  ;;  %v1074_v58 = vld [vmem:[#allocation8 + $0xe0] sm:$0xff] }
 0x195   :  { %v936_v4 = vadd.f32 %v1890_v1, %v2403_v49  ;;  %v1130_v5 = vmul.f32 %v1066_v3, %v933_v2 }
 0x197   :  { %v1131_v6 = vmul.f32 %v1067_v24, %v936_v4  ;;  %v1891_v8 = vpop.f32.mrb[44].mxu0 }
 0x198   :  { %v1892_v29 = vpop.f32.mrb[45].mxu0 }
 0x199   :  { %v1893_v10 = vadd.f32 %v1892_v29, %v1891_v8  ;;  %v1894_v11 = vpop.f32.mrb[46].mxu0  ;;  %v1152_v13 = vpack.c.bf16 %v1131_v6, %v1130_v5  ;;  %v1076_v8 = vld [vmem:[#allocation8 + $0xf0] sm:$0xff]  ;;  %v1077_v29 = vld [vmem:[#allocation8 + $0xf8] sm:$0xff] }
 0x19a   :  { %v1895_v16 = vpop.f32.mrb[47].mxu0 }
 0x19b   :  { %v941_v9 = vadd.f32 %v2397_v41, %v1893_v10  ;;  %v1896_v18 = vadd.f32 %v1895_v16, %v1894_v11  ;;  %2053 = vmatprep.mubr.bf16.mxu1 %v1152_v13  ;;  %v1071_v41 = vld [vmem:[#allocation8 + $0xc8] sm:$0xff]  ;;  %v2442_v16 = vld [vmem:[%s2495_s4] ss:$0 sm:$0xff]  ;;  %s2300_s4 = smov [#allocation11]  }
 0x19c   :  { %s1555_s21 = sshll.u32 %s2300_s4, 4  ;;  %s1556_s21 = int_to_ptr.vmem [resolvable:$true] %s1555_s21 }
 0x19d   :  { %v944_v43 = vadd.f32 %v2401_v46, %v1896_v18  ;;  %v1132_v22 = vmul.f32 %v1068_v20, %v941_v9  ;;  %s2260_s22 = scalar_lea.vmem %s1556_s21, 2048  ;;  %p2265_p5 = scmp.lt.s32.totalorder %s1556_s21, %s1556_s21 }
 0x19e   :  { %p2261_p4 = scmp.ne.s32.totalorder %s1556_s21, %s2260_s22  ;;  %p2266_p6 = scmp.lt.s32.totalorder %s2260_s22, %s2260_s22 }
 0x19f   :  { %v1133_v23 = vmul.f32 %v1069_v15, %v944_v43  ;;  %v1897_v25 = vpop.f32.mrb[48].mxu0 }
 0x1a0   :  { %v1898_v49 = vpop.f32.mrb[49].mxu0  ;;  %p2267_p7 = por %p2266_p6, %p2265_p5 }
 0x1a1   :  { %v1899_v27 = vadd.f32 %v1898_v49, %v1897_v25  ;;  %v1900_v28 = vpop.f32.mrb[50].mxu0  ;;  %v1153_v30 = vpack.c.bf16 %v1133_v23, %v1132_v22 }
 0x1a2   :  { %v1901_v31 = vpop.f32.mrb[51].mxu0  ;;  %p2268_p8 = pnand %p2267_p7, %p2261_p4 }
 0x1a3   :  { %v1902_v33 = vadd.f32 %v1901_v31, %v1900_v28  ;;  %v949_v34 = vadd.f32 %v1899_v27, %v2407_v54  ;;  %2054 = vmatmul.mubr.bf16.gmra.mrb[52].mxu1 %v1153_v30 }
 0x1a5   :  { %v952_v7 = vadd.f32 %v1902_v33, %v2411_v59  ;;  %v1134_v36 = vmul.f32 %v1070_v35, %v949_v34 }
 0x1a7   :  { %v1135_v37 = vmul.f32 %v1071_v41, %v952_v7  ;;  %v1903_v38 = vpop.f32.mrb[52].mxu0 }
 0x1a8   :  { %v1904_v46 = vpop.f32.mrb[53].mxu0 }
 0x1a9   :  { %v1905_v39 = vadd.f32 %v1904_v46, %v1903_v38  ;;  %v1906_v40 = vpop.f32.mrb[54].mxu0  ;;  %v1154_v42 = vpack.c.bf16 %v1135_v37, %v1134_v36 }
 0x1aa   :  { %v1907_v12 = vpop.f32.mrb[55].mxu0 }
 0x1ab   :  { %v957_v44 = vadd.f32 %v2405_v60, %v1905_v39  ;;  %v1908_v45 = vadd.f32 %v1907_v12, %v1906_v40  ;;  %2057 = vmatprep.mubr.bf16.mxu1 %v1154_v42  ;;  %v1075_v60 = vld [vmem:[#allocation8 + $0xe8] sm:$0xff] }
 0x1ad   :  { %v960_v54 = vadd.f32 %v2409_v0, %v1908_v45  ;;  %v1136_v50 = vmul.f32 %v1072_v47, %v957_v44 }
 0x1af   :  { %v1137_v51 = vmul.f32 %v1073_v48, %v960_v54  ;;  %v1909_v52 = vpop.f32.mrb[56].mxu0 }
 0x1b0   :  { %v1910_v59 = vpop.f32.mrb[57].mxu0 }
 0x1b1   :  { %v1911_v53 = vadd.f32 %v1910_v59, %v1909_v52  ;;  %v1912_v26 = vpop.f32.mrb[58].mxu0  ;;  %v1155_v55 = vpack.c.bf16 %v1137_v51, %v1136_v50 }
 0x1b2   :  { %v1913_v56 = vpop.f32.mrb[59].mxu0 }
 0x1b3   :  { %v1914_v57 = vadd.f32 %v1913_v56, %v1912_v26  ;;  %v965_v32 = vadd.f32 %v1911_v53, %v2415_v17  ;;  %2058 = vmatmul.mubr.bf16.gmra.mrb[56].mxu1 %v1155_v55 }
 0x1b5   :  { %v968_v61 = vadd.f32 %v1914_v57, %v2420_v21  ;;  %v1138_v62 = vmul.f32 %v1074_v58, %v965_v32 }
 0x1b7   :  { %v1139_v63 = vmul.f32 %v1075_v60, %v968_v61  ;;  %v1915_v1 = vpop.f32.mrb[60].mxu0 }
 0x1b8   :  { %v1916_v0 = vpop.f32.mrb[61].mxu0 }
 0x1b9   :  { %v1917_v2 = vadd.f32 %v1916_v0, %v1915_v1  ;;  %v1918_v3 = vpop.f32.mrb[62].mxu0  ;;  %v1156_v24 = vpack.c.bf16 %v1139_v63, %v1138_v62 }
 0x1ba   :  { %v1919_v4 = vpop.f32.mrb[63].mxu0 }
 0x1bb   :  { %v973_v5 = vadd.f32 %v2413_v14, %v1917_v2  ;;  %v1920_v6 = vadd.f32 %v1919_v4, %v1918_v3  ;;  %2061 = vmatprep.mubr.bf16.mxu1 %v1156_v24 }
 0x1bd   :  { %v976_v17 = vadd.f32 %v2418_v19, %v1920_v6  ;;  %v1140_v10 = vmul.f32 %v1076_v8, %v973_v5 }
 0x1bf   :  { %v1141_v11 = vmul.f32 %v1077_v29, %v976_v17 }
 0x1c1   :  { %v1157_v13 = vpack.c.bf16 %v1141_v11, %v1140_v10 }
 0x1c3   :  { %2062 = vmatmul.mubr.bf16.gmra.mrb[60].mxu1 %v1157_v13 }
 0x226   :  { %v2035_v21 = vpop.f32.mrb[32].mxu1 }
 0x227   :  { %v1263_v9 = vpop.f32.mrb[33].mxu1  ;;  %v1272_v14 = vadd.f32 %v2035_v21, %v2442_v16 }
 0x228   :  { %v2036_v18 = vpop.f32.mrb[34].mxu1  ;;  %v1264_v43 = vadd.f32 %v2442_v16, %v1263_v9 }
 0x229   :  { %v1275_v20 = vadd.f32 %v2036_v18, %v2442_v16  ;;  %v1266_v15 = vpop.f32.mrb[35].mxu1 }
 0x22a   :  { %v1267_v19 = vadd.f32 %v2442_v16, %v1266_v15 }
 0x22b   :  { %v1722_v22 = vpack.c.bf16 %v1275_v20, %v1272_v14 }
 0x22c   :  { %v1717_v23 = vpack.c.bf16 %v1267_v19, %v1264_v43 }
 0x22d   :  { %1794 = vst [vmem:[#allocation11 + $0x8] sm:$0xff] %v1722_v22  }
 0x22e   :  { %1718 = vst [vmem:[#allocation11] sm:$0xff] %v1717_v23  }
 0x236   :  { %v2039_v25 = vpop.f32.mrb[36].mxu1 }
 0x237   :  { %v1279_v49 = vpop.f32.mrb[37].mxu1  ;;  %v1288_v28 = vadd.f32 %v2039_v25, %v2442_v16 }
 0x238   :  { %v2040_v27 = vpop.f32.mrb[38].mxu1  ;;  %v1280_v33 = vadd.f32 %v2442_v16, %v1279_v49 }
 0x239   :  { %v1291_v30 = vadd.f32 %v2040_v27, %v2442_v16  ;;  %v1282_v31 = vpop.f32.mrb[39].mxu1 }
 0x23a   :  { %v1283_v34 = vadd.f32 %v2442_v16, %v1282_v31 }
 0x23b   :  { %v1732_v35 = vpack.c.bf16 %v1291_v30, %v1288_v28 }
 0x23c   :  { %v1727_v41 = vpack.c.bf16 %v1283_v34, %v1280_v33 }
 0x23d   :  { %1796 = vst [vmem:[#allocation11 + $0x18] sm:$0xff] %v1732_v35  }
 0x23e   :  { %1795 = vst [vmem:[#allocation11 + $0x10] sm:$0xff] %v1727_v41  }
 0x246   :  { %v2043_v7 = vpop.f32.mrb[40].mxu1 }
 0x247   :  { %v1295_v36 = vpop.f32.mrb[41].mxu1  ;;  %v1304_v38 = vadd.f32 %v2043_v7, %v2442_v16 }
 0x248   :  { %v2044_v37 = vpop.f32.mrb[42].mxu1  ;;  %v1296_v40 = vadd.f32 %v2442_v16, %v1295_v36 }
 0x249   :  { %v1307_v46 = vadd.f32 %v2044_v37, %v2442_v16  ;;  %v1298_v39 = vpop.f32.mrb[43].mxu1 }
 0x24a   :  { %v1299_v42 = vadd.f32 %v2442_v16, %v1298_v39 }
 0x24b   :  { %v1742_v12 = vpack.c.bf16 %v1307_v46, %v1304_v38 }
 0x24c   :  { %v1737_v44 = vpack.c.bf16 %v1299_v42, %v1296_v40 }
 0x24d   :  { %1798 = vst [vmem:[#allocation11 + $0x28] sm:$0xff] %v1742_v12  }
 0x24e   :  { %1797 = vst [vmem:[#allocation11 + $0x20] sm:$0xff] %v1737_v44  }
 0x256   :  { %v2047_v45 = vpop.f32.mrb[44].mxu1 }
 0x257   :  { %v1311_v47 = vpop.f32.mrb[45].mxu1  ;;  %v1320_v54 = vadd.f32 %v2047_v45, %v2442_v16 }
 0x258   :  { %v2048_v48 = vpop.f32.mrb[46].mxu1  ;;  %v1312_v52 = vadd.f32 %v2442_v16, %v1311_v47 }
 0x259   :  { %v1323_v50 = vadd.f32 %v2048_v48, %v2442_v16  ;;  %v1314_v51 = vpop.f32.mrb[47].mxu1 }
 0x25a   :  { %v1315_v59 = vadd.f32 %v2442_v16, %v1314_v51 }
 0x25b   :  { %v1752_v53 = vpack.c.bf16 %v1323_v50, %v1320_v54 }
 0x25c   :  { %v1747_v26 = vpack.c.bf16 %v1315_v59, %v1312_v52 }
 0x25d   :  { %1800 = vst [vmem:[#allocation11 + $0x38] sm:$0xff] %v1752_v53  }
 0x25e   :  { %1799 = vst [vmem:[#allocation11 + $0x30] sm:$0xff] %v1747_v26  }
 0x266   :  { %v2051_v55 = vpop.f32.mrb[48].mxu1 }
 0x267   :  { %v1327_v56 = vpop.f32.mrb[49].mxu1  ;;  %v1336_v32 = vadd.f32 %v2051_v55, %v2442_v16 }
 0x268   :  { %v2052_v57 = vpop.f32.mrb[50].mxu1  ;;  %v1328_v61 = vadd.f32 %v2442_v16, %v1327_v56 }
 0x269   :  { %v1339_v58 = vadd.f32 %v2052_v57, %v2442_v16  ;;  %v1330_v60 = vpop.f32.mrb[51].mxu1 }
 0x26a   :  { %v1331_v62 = vadd.f32 %v2442_v16, %v1330_v60 }
 0x26b   :  { %v1762_v63 = vpack.c.bf16 %v1339_v58, %v1336_v32 }
 0x26c   :  { %v1757_v1 = vpack.c.bf16 %v1331_v62, %v1328_v61 }
 0x26d   :  { %1802 = vst [vmem:[#allocation11 + $0x48] sm:$0xff] %v1762_v63  }
 0x26e   :  { %1801 = vst [vmem:[#allocation11 + $0x40] sm:$0xff] %v1757_v1  }
 0x276   :  { %v2055_v0 = vpop.f32.mrb[52].mxu1 }
 0x277   :  { %v1343_v2 = vpop.f32.mrb[53].mxu1  ;;  %v1352_v24 = vadd.f32 %v2055_v0, %v2442_v16 }
 0x278   :  { %v2056_v3 = vpop.f32.mrb[54].mxu1  ;;  %v1344_v6 = vadd.f32 %v2442_v16, %v1343_v2 }
 0x279   :  { %v1355_v4 = vadd.f32 %v2056_v3, %v2442_v16  ;;  %v1346_v5 = vpop.f32.mrb[55].mxu1 }
 0x27a   :  { %v1347_v8 = vadd.f32 %v2442_v16, %v1346_v5 }
 0x27b   :  { %v1772_v29 = vpack.c.bf16 %v1355_v4, %v1352_v24 }
 0x27c   :  { %v1767_v17 = vpack.c.bf16 %v1347_v8, %v1344_v6 }
 0x27d   :  { %1804 = vst [vmem:[#allocation11 + $0x58] sm:$0xff] %v1772_v29  }
 0x27e   :  { %1803 = vst [vmem:[#allocation11 + $0x50] sm:$0xff] %v1767_v17  }
 0x286   :  { %v2059_v10 = vpop.f32.mrb[56].mxu1 }
 0x287   :  { %v1359_v11 = vpop.f32.mrb[57].mxu1  ;;  %v1368_v21 = vadd.f32 %v2059_v10, %v2442_v16 }
 0x288   :  { %v2060_v13 = vpop.f32.mrb[58].mxu1  ;;  %v1360_v14 = vadd.f32 %v2442_v16, %v1359_v11 }
 0x289   :  { %v1371_v9 = vadd.f32 %v2060_v13, %v2442_v16  ;;  %v1362_v18 = vpop.f32.mrb[59].mxu1 }
 0x28a   :  { %v1363_v20 = vadd.f32 %v2442_v16, %v1362_v18 }
 0x28b   :  { %v1782_v15 = vpack.c.bf16 %v1371_v9, %v1368_v21 }
 0x28c   :  { %v1777_v43 = vpack.c.bf16 %v1363_v20, %v1360_v14 }
 0x28d   :  { %1806 = vst [vmem:[#allocation11 + $0x68] sm:$0xff] %v1782_v15  }
 0x28e   :  { %1805 = vst [vmem:[#allocation11 + $0x60] sm:$0xff] %v1777_v43  }
 0x296   :  { %v2063_v19 = vpop.f32.mrb[60].mxu1 }
 0x297   :  { %v1375_v22 = vpop.f32.mrb[61].mxu1  ;;  %v1384_v25 = vadd.f32 %v2063_v19, %v2442_v16 }
 0x298   :  { %v2064_v23 = vpop.f32.mrb[62].mxu1  ;;  %v1376_v28 = vadd.f32 %v2442_v16, %v1375_v22 }
 0x299   :  { %v1387_v49 = vadd.f32 %v2064_v23, %v2442_v16  ;;  %v1378_v27 = vpop.f32.mrb[63].mxu1 }
 0x29a   :  { %v1379_v30 = vadd.f32 %v2442_v16, %v1378_v27 }
 0x29b   :  { %v1792_v31 = vpack.c.bf16 %v1387_v49, %v1384_v25 }
 0x29c   :  { %v1787_v33 = vpack.c.bf16 %v1379_v30, %v1376_v28 }
 0x29d   :  { %1808 = vst [vmem:[#allocation11 + $0x78] sm:$0xff] %v1792_v31  }
 0x29e   :  { %1807 = vst [vmem:[#allocation11 + $0x70] sm:$0xff] %v1787_v33  }
 0x29f   :  { %2271 = shalt.err (!%p2268_p8)
}
 0x2a0   :  { %s2272_s25 = scalar_lea.hbm %s2496_s5, 2048 }
 0x2a1   :  { %p2273_p9 = scmp.ne.s32.totalorder %s2496_s5, %s2272_s25  ;;  %p2276_p10 = scmp.lt.u32.totalorder %s2272_s25, %s2496_s5 }
 0x2a3   :  { %p2278_p11 = pnand %p2276_p10, %p2273_p9 }
 0x2a5   :  { %2281 = shalt.err (!%p2278_p11)
}
 0x2a6   :  { %1561 = dma.vmem_to_hbm [thread:$0]  %s1556_s21, 2048, %s2496_s5, [#allocation5], %s2291_s28, %s2291_s28, %s2292_s29  }
 0x2a7   :  { %2288 = dma.done.wait [#allocation5], 2048  }
 0x2a8   :  { %2289 = vsyncadd [#allocation5], 4294965248 }
 0x2a9   :  { %1565 = vsyncpa [#allocation4], 1 }
 0x2aa   :  { %1566 = vsyncpa [#allocation7], 1 }
 0x2ab   :  { %1567 = vsyncpa [#allocation10], 1 }
 0x2ac   :  { %1568 = vsyncpa [#allocation5], 1 }

</bundles_post_ra>
